<compile_context>
chip_gen: v7x
topology: tpu7x:2x2x1
jax: 0.10.0
libtpu: 0.0.40
codegen_flags: <defaults>
</compile_context>

<pallas_src>
import functools

import jax
import jax.numpy as jnp
import numpy as np
from jax import lax
from jax.experimental import pallas as pl
from jax.experimental.pallas import tpu as pltpu


def _round_up(x: int, m: int) -> int:
    return ((x + m - 1) // m) * m


# --------------------------------------------------------------------------
# Kernel A: gather fused in-kernel (tables VMEM-resident), batch on lanes.
# --------------------------------------------------------------------------
def _bpr_fused_kernel(eu_t_ref, ei_t_ref, u_ref, i_ref, j_ref, out_ref, *,
                      batch, tile):
    """One batch tile: one-hot MXU gather + fused BPR score + masked partial."""
    t = pl.program_id(0)

    eu_t = eu_t_ref[...]                       # (F, U)  user table, transposed
    ei_t = ei_t_ref[...]                       # (F, I)  item table, transposed
    u_idx = u_ref[...]                         # (1, tile) int32
    i_idx = i_ref[...]                         # (1, tile) int32
    j_idx = j_ref[...]                         # (1, tile) int32

    n_user = eu_t.shape[1]
    n_item = ei_t.shape[1]

    # One-hot "gather" matrices: table rows on sublanes, batch on lanes.
    row_u = lax.broadcasted_iota(jnp.int32, (n_user, tile), 0)
    row_i = lax.broadcasted_iota(jnp.int32, (n_item, tile), 0)
    oh_u = (row_u == u_idx).astype(jnp.float32)                 # (U, tile)
    # onehot(item_j) - onehot(item_i): the vj - vi difference is fused into a
    # single MXU matmul below.
    oh_d = ((row_i == j_idx).astype(jnp.float32)
            - (row_i == i_idx).astype(jnp.float32))             # (I, tile)

    # Gather via MXU: u^T = EU^T @ onehot_u ; (vj - vi)^T = EI^T @ oh_d.
    u_t = jnp.dot(eu_t, oh_u, preferred_element_type=jnp.float32)   # (F, tile)
    d_t = jnp.dot(ei_t, oh_d, preferred_element_type=jnp.float32)   # (F, tile)

    # BPR score: s = sum_f u * (vj - vi)  ==  (u.vj) - (u.vi);  lane-dense.
    s = jnp.sum(u_t * d_t, axis=0, keepdims=True)                   # (1, tile)
    sig = jax.nn.sigmoid(s)                                          # (1, tile)

    # Mask columns that are only index padding (last ragged tile).
    col = lax.broadcasted_iota(jnp.int32, (1, tile), 1) + t * tile
    sig = jnp.where(col < batch, sig, jnp.float32(0.0))

    partial = jnp.sum(sig)                                           # scalar
    out_ref[...] = jnp.broadcast_to(partial, (1, 128)).astype(jnp.float32)


# --------------------------------------------------------------------------
# Kernel B: tables too big for VMEM -> wrapper gathers, kernel fuses the rest.
# --------------------------------------------------------------------------
def _bpr_gathered_kernel(u_ref, vi_ref, vj_ref, out_ref, *, batch, tile):
    """One batch tile of pre-gathered rows: fused score + masked partial sum."""
    t = pl.program_id(0)

    u = u_ref[...].astype(jnp.float32)                               # (tile, F)
    d = vj_ref[...].astype(jnp.float32) - vi_ref[...].astype(jnp.float32)

    s = jnp.sum(u * d, axis=-1, keepdims=True)                       # (tile, 1)
    sig = jax.nn.sigmoid(s)

    # Mask rows past the end of the batch (ragged last tile reads stale VMEM;
    # the jnp.where discards it, NaN-safe).
    row = lax.broadcasted_iota(jnp.int32, (tile, 1), 0) + t * tile
    sig = jnp.where(row < batch, sig, jnp.float32(0.0))

    partial = jnp.sum(sig)
    out_ref[...] = jnp.broadcast_to(partial, (1, 128)).astype(jnp.float32)


# --------------------------------------------------------------------------
# Tile selection
# --------------------------------------------------------------------------
def _pick_rows_per_step(batch, row_bytes, *, target_step_bytes=6 << 20,
                        buffered_budget_bytes=12 << 20):
    """Rows/step for the HBM-bound (pre-gathered) path; multiple of 8."""
    tile = min(target_step_bytes // row_bytes,
               buffered_budget_bytes // (2 * row_bytes))
    tile = max(8, (tile // 8) * 8)
    full = _round_up(batch, 8)
    if full <= tile:
        # One tile would cover the whole batch; split in two when each half is
        # still big enough to amortize the ~0.35us per-step overhead, so the
        # "parallel" grid axis feeds both v7x TensorCores.
        if batch * row_bytes >= (2 << 20):
            return _round_up((batch + 1) // 2, 8)
        return full
    return tile


def _pick_fused_tile(batch, n_user, n_item, factor, *,
                     temp_budget_bytes=8 << 20, max_rows=8192):
    """Rows/step for the fused-gather path; multiple of 128 (lane-dense)."""
    per_row = 4 * (n_user + 2 * n_item + 2 * factor + 16)   # f32 temps per row
    tile = min(max_rows, max(128, temp_budget_bytes // per_row))
    tile = max(128, (tile // 128) * 128)
    full = _round_up(batch, 128)
    if full <= tile:
        if batch >= 4096:                      # keep 2 tiles for v7x's 2 TCs
            return _round_up((batch + 1) // 2, 128)
        return full
    return tile


# --------------------------------------------------------------------------
# Wrappers
# --------------------------------------------------------------------------
def _bpr_fused(embed_user, embed_item, user, item_i, item_j, rows_per_step):
    B = int(user.shape[0])
    n_user, F = int(embed_user.shape[0]), int(embed_user.shape[1])
    n_item = int(embed_item.shape[0])

    if rows_per_step is None:
        tile = _pick_fused_tile(B, n_user, n_item, F)
    else:
        tile = max(128, _round_up(int(rows_per_step), 128))
    num_tiles = -(-B // tile)
    Bp = num_tiles * tile

    def prep(idx):
        idx = idx.astype(jnp.int32)
        if Bp != B:                       # pad with valid index 0; masked later
            idx = jnp.pad(idx, (0, Bp - B))
        return idx.reshape(num_tiles, tile)

    u_idx, i_idx, j_idx = prep(user), prep(item_i), prep(item_j)

    # Tiny one-time transposes so the kernel's gather matmuls land batch-on-lanes.
    eu_t = embed_user.astype(jnp.float32).T          # (F, U)
    ei_t = embed_item.astype(jnp.float32).T          # (F, I)

    kernel = functools.partial(_bpr_fused_kernel, batch=B, tile=tile)
    flops = 2 * B * F * (n_user + n_item) + 5 * B * F
    bytes_accessed = 3 * B * 4 + (n_user + n_item) * F * 4 + num_tiles * 128 * 4

    partials = pl.pallas_call(
        kernel,
        out_shape=jax.ShapeDtypeStruct((1, num_tiles * 128), jnp.float32),
        grid=(num_tiles,),
        in_specs=[
            pl.BlockSpec((F, n_user), lambda t: (0, 0)),   # whole table, resident
            pl.BlockSpec((F, n_item), lambda t: (0, 0)),   # whole table, resident
            pl.BlockSpec((1, tile), lambda t: (t, 0)),
            pl.BlockSpec((1, tile), lambda t: (t, 0)),
            pl.BlockSpec((1, tile), lambda t: (t, 0)),
        ],
        out_specs=pl.BlockSpec((1, 128), lambda t: (0, t)),
        compiler_params=pltpu.CompilerParams(
            dimension_semantics=("parallel",),
            vmem_limit_bytes=32 << 20),
        cost_estimate=pl.CostEstimate(
            flops=flops, transcendentals=B, bytes_accessed=bytes_accessed),
    )(eu_t, ei_t, u_idx, i_idx, j_idx)

    return jnp.sum(partials.reshape(num_tiles, 128)[:, 0])


def _bpr_gathered(embed_user, embed_item, user, item_i, item_j, rows_per_step):
    B = int(user.shape[0])
    F = int(embed_user.shape[1])

    # Row gathers stay in the wrapper only when the tables do not fit VMEM
    # (per-row 128B DMAs in-kernel would be worse for huge tables).
    u = jnp.take(embed_user, user, axis=0)     # (B, F)
    vi = jnp.take(embed_item, item_i, axis=0)  # (B, F)
    vj = jnp.take(embed_item, item_j, axis=0)  # (B, F)

    row_bytes = 3 * F * u.dtype.itemsize
    if rows_per_step is None:
        tile = _pick_rows_per_step(B, row_bytes)
    else:
        tile = max(8, _round_up(int(rows_per_step), 8))
    num_tiles = -(-B // tile)

    kernel = functools.partial(_bpr_gathered_kernel, batch=B, tile=tile)

    partials = pl.pallas_call(
        kernel,
        out_shape=jax.ShapeDtypeStruct((1, num_tiles * 128), jnp.float32),
        grid=(num_tiles,),
        in_specs=[
            pl.BlockSpec((tile, F), lambda t: (t, 0)),
            pl.BlockSpec((tile, F), lambda t: (t, 0)),
            pl.BlockSpec((tile, F), lambda t: (t, 0)),
        ],
        out_specs=pl.BlockSpec((1, 128), lambda t: (0, t)),
        compiler_params=pltpu.CompilerParams(
            dimension_semantics=("parallel",),
            vmem_limit_bytes=32 << 20),
        cost_estimate=pl.CostEstimate(
            flops=3 * B * F, transcendentals=B,
            bytes_accessed=B * row_bytes + num_tiles * 128 * 4),
    )(u, vi, vj)

    return jnp.sum(partials.reshape(num_tiles, 128)[:, 0])


def bpr_forward(embed_user, embed_item, user, item_i, item_j, *,
                fuse_gather_table_bytes=2 << 20, fuse_gather_max_rows=1024,
                rows_per_step=None):
    """Pallas BPR forward: scalar sum(sigmoid((u.vj) - (u.vi)))."""
    B = int(user.shape[0])
    if B == 0:   # kernel would never run / output never initialized
        return jnp.float32(0.0)

    n_user, F = int(embed_user.shape[0]), int(embed_user.shape[1])
    n_item = int(embed_item.shape[0])
    table_bytes = (n_user + n_item) * F * 4

    if (table_bytes <= fuse_gather_table_bytes
            and max(n_user, n_item) <= fuse_gather_max_rows):
        return _bpr_fused(embed_user, embed_item, user, item_i, item_j,
                          rows_per_step)
    return _bpr_gathered(embed_user, embed_item, user, item_i, item_j,
                         rows_per_step)


def bpr_forward_ref(embed_user, embed_item, user, item_i, item_j):
    """Plain-JAX reference matching the PyTorch forward."""
    u = embed_user[user]
    vi = embed_item[item_i]
    vj = embed_item[item_j]
    pred_i = jnp.sum(u * vi, axis=-1)
    pred_j = jnp.sum(u * vj, axis=-1)
    return jnp.sum(jax.nn.sigmoid(pred_j - pred_i))


if __name__ == "__main__":
    user_num, item_num, factor_num = 32, 64, 32

    key = jax.random.PRNGKey(0)
    k_u, k_i, k_b = jax.random.split(key, 3)

    # nn.init.normal_(std=0.01) for both embedding tables (deterministic here).
    embed_user = (0.01 * jax.random.normal(k_u, (user_num, factor_num))
                  ).astype(jnp.float32)
    embed_item = (0.01 * jax.random.normal(k_i, (item_num, factor_num))
                  ).astype(jnp.float32)

    # Exercise: fused single tile; fused multi-tile + masked tail; pre-gathered
    # ragged single tile; pre-gathered multi-tile + masked tail.
    cases = [
        dict(batch=8),
        dict(batch=300, rows_per_step=128),
        dict(batch=300, fuse_gather_table_bytes=0),
        dict(batch=300, fuse_gather_table_bytes=0, rows_per_step=128),
    ]
    for case in cases:
        batch = case.pop("batch")
        kb1, kb2, kb3, k_b = jax.random.split(k_b, 4)
        user = jax.random.randint(kb1, (batch,), 0, user_num, dtype=jnp.int32)
        item_i = jax.random.randint(kb2, (batch,), 0, item_num, dtype=jnp.int32)
        item_j = jax.random.randint(kb3, (batch,), 0, item_num, dtype=jnp.int32)

        out = jax.block_until_ready(
            bpr_forward(embed_user, embed_item, user, item_i, item_j, **case))
        ref = jax.block_until_ready(
            bpr_forward_ref(embed_user, embed_item, user, item_i, item_j))

        if not np.allclose(np.asarray(out), np.asarray(ref),
                           rtol=1e-5, atol=1e-5):
            raise AssertionError(
                f"mismatch (B={batch}, {case}): pallas={out} ref={ref}")

    print("KERNEL_OK")
</pallas_src>

<mosaic_0001>
module attributes {stable_mosaic.version = 11 : i64} {
  func.func @_bpr_fused_kernel(%arg0: i32, %arg1: memref<32x32xf32, #tpu.memory_space<vmem>>, %arg2: memref<32x64xf32, #tpu.memory_space<vmem>>, %arg3: memref<1x128xi32, #tpu.memory_space<vmem>>, %arg4: memref<1x128xi32, #tpu.memory_space<vmem>>, %arg5: memref<1x128xi32, #tpu.memory_space<vmem>>, %arg6: memref<1x128xf32, #tpu.memory_space<vmem>>) attributes {dimension_semantics = [#tpu.dimension_semantics<parallel>], iteration_bounds = array<i64: 1>, scalar_prefetch = 0 : i64, scratch_operands = 0 : i64, tpu.core_type = #tpu.core_type<tc>, window_params = [{pipeline_mode = #tpu.pipeline_mode<synchronous>, transform_indices = @transform_0, window_bounds = array<i64: 32, 32>}, {pipeline_mode = #tpu.pipeline_mode<synchronous>, transform_indices = @transform_1, window_bounds = array<i64: 32, 64>}, {transform_indices = @transform_2, window_bounds = array<i64: 1, 128>}, {transform_indices = @transform_3, window_bounds = array<i64: 1, 128>}, {transform_indices = @transform_4, window_bounds = array<i64: 1, 128>}, {transform_indices = @transform_5, window_bounds = array<i64: 1, 128>}]} {
    %c0 = arith.constant 0 : index
    %c0_0 = arith.constant 0 : index
    %0 = vector.load %arg1[%c0, %c0_0] : memref<32x32xf32, #tpu.memory_space<vmem>>, vector<32x32xf32>
    %c0_1 = arith.constant 0 : index
    %c0_2 = arith.constant 0 : index
    %1 = vector.load %arg2[%c0_1, %c0_2] : memref<32x64xf32, #tpu.memory_space<vmem>>, vector<32x64xf32>
    %c0_3 = arith.constant 0 : index
    %c0_4 = arith.constant 0 : index
    %2 = vector.load %arg3[%c0_3, %c0_4] : memref<1x128xi32, #tpu.memory_space<vmem>>, vector<1x128xi32>
    %c0_5 = arith.constant 0 : index
    %c0_6 = arith.constant 0 : index
    %3 = vector.load %arg4[%c0_5, %c0_6] : memref<1x128xi32, #tpu.memory_space<vmem>>, vector<1x128xi32>
    %c0_7 = arith.constant 0 : index
    %c0_8 = arith.constant 0 : index
    %4 = vector.load %arg5[%c0_7, %c0_8] : memref<1x128xi32, #tpu.memory_space<vmem>>, vector<1x128xi32>
    %5 = tpu.iota {dimensions = array<i32: 0>} : vector<32x128xi32>
    %6 = tpu.iota {dimensions = array<i32: 0>} : vector<64x128xi32>
    %7 = vector.broadcast %2 : vector<1x128xi32> to vector<32x128xi32>
    %8 = arith.cmpi eq, %5, %7 : vector<32x128xi32>
    %9 = arith.extui %8 : vector<32x128xi1> to vector<32x128xi32>
    %10 = arith.sitofp %9 : vector<32x128xi32> to vector<32x128xf32>
    %11 = vector.broadcast %4 : vector<1x128xi32> to vector<64x128xi32>
    %12 = arith.cmpi eq, %6, %11 : vector<64x128xi32>
    %13 = arith.extui %12 : vector<64x128xi1> to vector<64x128xi32>
    %14 = arith.sitofp %13 : vector<64x128xi32> to vector<64x128xf32>
    %15 = vector.broadcast %3 : vector<1x128xi32> to vector<64x128xi32>
    %16 = arith.cmpi eq, %6, %15 : vector<64x128xi32>
    %17 = arith.extui %16 : vector<64x128xi1> to vector<64x128xi32>
    %18 = arith.sitofp %17 : vector<64x128xi32> to vector<64x128xf32>
    %19 = arith.subf %14, %18 : vector<64x128xf32>
    %cst = arith.constant dense<0.000000e+00> : vector<32x128xf32>
    %20 = tpu.matmul %0, %10, %cst {dimension_numbers = #tpu.dot_dimension_numbers<[1], [0], [0], [1], [0, 0, 1, 1], [], []>} : vector<32x32xf32>, vector<32x128xf32>, vector<32x128xf32> -> vector<32x128xf32>
    %cst_9 = arith.constant dense<0.000000e+00> : vector<32x128xf32>
    %21 = tpu.matmul %1, %19, %cst_9 {dimension_numbers = #tpu.dot_dimension_numbers<[1], [0], [0], [1], [0, 0, 1, 1], [], []>} : vector<32x64xf32>, vector<64x128xf32>, vector<32x128xf32> -> vector<32x128xf32>
    %22 = arith.mulf %20, %21 : vector<32x128xf32>
    %cst_10 = arith.constant dense<0.000000e+00> : vector<128xf32>
    %23 = vector.multi_reduction <add>, %22, %cst_10 [0] : vector<32x128xf32> to vector<128xf32>
    %24 = vector.shape_cast %23 : vector<128xf32> to vector<1x128xf32>
    %25 = arith.negf %24 : vector<1x128xf32>
    %26 = math.exp %25 : vector<1x128xf32>
    %cst_11 = arith.constant 1.000000e+00 : f32
    %27 = vector.broadcast %cst_11 : f32 to vector<1x128xf32>
    %28 = arith.addf %27, %26 : vector<1x128xf32>
    %29 = arith.divf %27, %28 : vector<1x128xf32>
    %30 = tpu.iota {dimensions = array<i32: 1>} : vector<1x128xi32>
    %c128_i32 = arith.constant 128 : i32
    %31 = arith.muli %arg0, %c128_i32 : i32
    %32 = vector.broadcast %31 : i32 to vector<1x128xi32>
    %33 = arith.addi %30, %32 : vector<1x128xi32>
    %c8_i32 = arith.constant 8 : i32
    %34 = vector.broadcast %c8_i32 : i32 to vector<1x128xi32>
    %35 = arith.cmpi slt, %33, %34 : vector<1x128xi32>
    %cst_12 = arith.constant 0.000000e+00 : f32
    %36 = vector.broadcast %cst_12 : f32 to vector<1x128xf32>
    %37 = arith.select %35, %29, %36 : vector<1x128xi1>, vector<1x128xf32>
    %38 = vector.shape_cast %37 : vector<1x128xf32> to vector<1x1x128xf32>
    %cst_13 = arith.constant dense<0.000000e+00> : vector<1xf32>
    %39 = vector.multi_reduction <add>, %38, %cst_13 [1, 2] : vector<1x1x128xf32> to vector<1xf32>
    %40 = vector.shape_cast %39 : vector<1xf32> to vector<1x1x1xf32>
    %41 = vector.extract %40[0, 0, 0] : f32 from vector<1x1x1xf32>
    %42 = vector.broadcast %41 : f32 to vector<1x128xf32>
    %c0_14 = arith.constant 0 : index
    %c0_15 = arith.constant 0 : index
    %43 = vector.load %arg6[%c0_14, %c0_15] : memref<1x128xf32, #tpu.memory_space<vmem>>, vector<1x128xf32>
    tpu.vector_store %arg6[%c0_14, %c0_15], %42 {strides = array<i32>} : memref<1x128xf32, #tpu.memory_space<vmem>>, vector<1x128xf32>,
    return
  }
  func.func @transform_0(%arg0: i32) -> (i32, i32) {
    %c0_i32 = arith.constant 0 : i32
    %c0_i32_0 = arith.constant 0 : i32
    %c0_i32_1 = arith.constant 0 : i32
    return %c0_i32, %c0_i32_0 : i32, i32
  }
  func.func @transform_1(%arg0: i32) -> (i32, i32) {
    %c0_i32 = arith.constant 0 : i32
    %c0_i32_0 = arith.constant 0 : i32
    %c0_i32_1 = arith.constant 0 : i32
    return %c0_i32, %c0_i32_0 : i32, i32
  }
  func.func @transform_2(%arg0: i32) -> (i32, i32) {
    %c0_i32 = arith.constant 0 : i32
    %c0_i32_0 = arith.constant 0 : i32
    return %arg0, %c0_i32 : i32, i32
  }
  func.func @transform_3(%arg0: i32) -> (i32, i32) {
    %c0_i32 = arith.constant 0 : i32
    %c0_i32_0 = arith.constant 0 : i32
    return %arg0, %c0_i32 : i32, i32
  }
  func.func @transform_4(%arg0: i32) -> (i32, i32) {
    %c0_i32 = arith.constant 0 : i32
    %c0_i32_0 = arith.constant 0 : i32
    return %arg0, %c0_i32 : i32, i32
  }
  func.func @transform_5(%arg0: i32) -> (i32, i32) {
    %c0_i32 = arith.constant 0 : i32
    %c0_i32_0 = arith.constant 0 : i32
    return %c0_i32, %arg0 : i32, i32
  }
}

</mosaic_0001>

<bundles_post_ra>
// kernel: tpu_custom_call.1
= control target key start
LH: loop header
LB: loop body
LE: loop exit
PB: predicated region body
PF: predicated region fallthrough
CT: control target
= control target key end

     0   :  { %10 = vsyncpa [#allocation3], 0  ;;  %s703_s0 = inlined_call_operand.hbm [shape: f32[32,32], index: 0, kind: input, shape index: {}]   ;;  %s704_s1 = inlined_call_operand.hbm [shape: f32[32,64], index: 1, kind: input, shape index: {}]   ;;  %s705_s2 = inlined_call_operand.vmem [shape: s32[1,128], index: 2, kind: input, shape index: {}]   ;;  %s706_s3 = inlined_call_operand.vmem [shape: s32[1,128], index: 3, kind: input, shape index: {}]   ;;  %s707_s4 = inlined_call_operand.vmem [shape: s32[1,128], index: 4, kind: input, shape index: {}]   ;;  %s708_s5 = inlined_call_operand.hbm [shape: f32[1,128], index: 5, kind: output, shape index: {}]  }
   0x1   :  { %11 = vsyncpa [#allocation6], 0 }
   0x2   :  { %12 = vsyncpa [#allocation4], 0  ;;  %s601_s18 = smov [#allocation2]   ;;  %s529_s22 = scalar_lea.hbm %s703_s0, 512 }
   0x3   :  { %s18_s19 = sshll.u32 %s601_s18, 4  ;;  %p530_p0 = scmp.ne.s32.totalorder %s703_s0, %s529_s22  ;;  %s19_s19 = int_to_ptr.vmem [resolvable:$true] %s18_s19 }
   0x4   :  { %p533_p1 = scmp.lt.u32.totalorder %s529_s22, %s703_s0 }
   0x6   :  { %p535_p2 = pnand %p533_p1, %p530_p0 }
   0x8   :  { %538 = shalt.err (!%p535_p2)
}
   0x9   :  { %s539_s27 = scalar_lea.vmem %s19_s19, 512  ;;  %p544_p4 = scmp.lt.s32.totalorder %s19_s19, %s19_s19 }
   0xa   :  { %p540_p3 = scmp.ne.s32.totalorder %s19_s19, %s539_s27  ;;  %p545_p5 = scmp.lt.s32.totalorder %s539_s27, %s539_s27 }
   0xc   :  { %p546_p6 = por %p545_p5, %p544_p4 }
   0xe   :  { %p547_p7 = pnand %p546_p6, %p540_p3 }
  0x10   :  { %550 = shalt.err (!%p547_p7)
}
  0x11   :  { %s602_s28 = smov 128   ;;  %s603_s29 = smov 8  }
  0x12   :  { %24 = dma.hbm_to_vmem [thread:$0]  %s703_s0, 512, %s19_s19, [#allocation3], %s602_s28, %s602_s28, %s603_s29  }
  0x13   :  { %s604_s7 = smov [#allocation5]   ;;  %s551_s11 = scalar_lea.hbm %s704_s1, 512 }
  0x14   :  { %s30_s8 = sshll.u32 %s604_s7, 4  ;;  %p552_p8 = scmp.ne.s32.totalorder %s704_s1, %s551_s11  ;;  %s31_s8 = int_to_ptr.vmem [resolvable:$true] %s30_s8 }
  0x15   :  { %p555_p9 = scmp.lt.u32.totalorder %s551_s11, %s704_s1 }
  0x17   :  { %p557_p10 = pnand %p555_p9, %p552_p8 }
  0x19   :  { %560 = shalt.err (!%p557_p10)
}
  0x1a   :  { %s561_s16 = scalar_lea.vmem %s31_s8, 512  ;;  %p566_p12 = scmp.lt.s32.totalorder %s31_s8, %s31_s8 }
  0x1b   :  { %p562_p11 = scmp.ne.s32.totalorder %s31_s8, %s561_s16  ;;  %p567_p13 = scmp.lt.s32.totalorder %s561_s16, %s561_s16 }
  0x1d   :  { %p568_p0 = por %p567_p13, %p566_p12 }
  0x1f   :  { %p569_p1 = pnand %p568_p0, %p562_p11 }
  0x21   :  { %572 = shalt.err (!%p569_p1)
}
  0x22   :  { %36 = dma.hbm_to_vmem [thread:$0]  %s704_s1, 512, %s31_s8, [#allocation6], %s602_s28, %s602_s28, %s603_s29  }
  0x23   :  { %595 = dma.done.wait [#allocation3], 512  }
  0x24   :  { %596 = vsyncadd [#allocation3], 4294966784 }
  0x25   :  { %597 = dma.done.wait [#allocation6], 512  }
  0x26   :  { %598 = vsyncadd [#allocation6], 4294966784  ;;  %v60_v0 = vlaneseq  ;;  %vm149_vm0 = vcmask 261120   ;;  %vm247_vm1 = vcmask 523264   ;;  %v666_v7 = vld [vmem:[%s706_s3] ss:$0 sm:$0xff] }
  0x27   :  { %v405_v8 = vld [vmem:[%s707_s4] ss:$0 sm:$0xff]  ;;  %v605_v13 = vmov 0.0   ;;  %v606_v30 = vmov 1.0|1.0   ;;  %v50_v43 = vld [vmem:[#allocation2 + $0x8] sm:$0xff] }
  0x28   :  { %v61_v1 = vshrl.u32 %v60_v0, 7  ;;  %v49_v11 = vld [vmem:[#allocation2] sm:$0xff]  ;;  %v51_v44 = vld [vmem:[#allocation2 + $0x10] sm:$0xff]  ;;  %v52_v46 = vld [vmem:[#allocation2 + $0x18] sm:$0xff] }
  0x29   :  { %v53_v12 = vld [vmem:[#allocation5] sm:$0xff]  ;;  %464 = vmatprep.mubr.msk.f32.mxu0 %vm149_vm0, %v49_v11  ;;  %v54_v47 = vld [vmem:[#allocation5 + $0x8] sm:$0xff]  ;;  %v55_v48 = vld [vmem:[#allocation5 + $0x10] sm:$0xff]  ;;  %v365_v11 = vand.u32 127, %v60_v0 }
  0x2a   :  { %v62_v2 = vadd.s32 8, %v61_v1  ;;  %v63_v3 = vadd.s32 16, %v61_v1  ;;  %v64_v4 = vadd.s32 24, %v61_v1  ;;  %v65_v5 = vadd.s32 32, %v61_v1  ;;  %v400_v18 = vld [vmem:[%s705_s2] ss:$0 sm:$0xff]  ;;  %486 = vmatprep.mubr.msk.f32.mxu1 %vm247_vm1, %v53_v12 }
  0x2b   :  { %v66_v6 = vadd.s32 40, %v61_v1  ;;  %v67_v9 = vadd.s32 48, %v61_v1  ;;  %v68_v10 = vadd.s32 56, %v61_v1  ;;  %vm89_vm2 = vcmp.eq.s32.totalorder %v61_v1, %v405_v8  ;;  %v56_v49 = vld [vmem:[#allocation5 + $0x18] sm:$0xff]  ;;  %s607_s2 = smov [#allocation7]  }
  0x2c   :  { %vm90_vm3 = vcmp.eq.s32.totalorder %v62_v2, %v405_v8  ;;  %vm117_vm4 = vcmp.eq.s32.totalorder %v61_v1, %v666_v7  ;;  %vm118_vm5 = vcmp.eq.s32.totalorder %v62_v2, %v666_v7  ;;  %v406_v14 = vsel %vm89_vm2, 1.0, %v605_v13  ;;  %s390_s4 = sshll.u32 %s607_s2, 4  ;;  %s391_s4 = int_to_ptr.vmem [resolvable:$true] %s390_s4 }
  0x2d   :  { %v407_v15 = vsel %vm90_vm3, 1.0, %v605_v13  ;;  %v415_v16 = vsel %vm117_vm4, 1.0, %v605_v13  ;;  %v416_v17 = vsel %vm118_vm5, 1.0, %v605_v13  ;;  %vm91_vm6 = vcmp.eq.s32.totalorder %v63_v3, %v405_v8  ;;  %s573_s23 = scalar_lea.vmem %s391_s4, 16  ;;  %s577_s24 = scalar_lea.vmem %s391_s4, 32 }
  0x2e   :  { %v141_v19 = vsub.f32 %v406_v14, %v415_v16  ;;  %v142_v20 = vsub.f32 %v407_v15, %v416_v17  ;;  %vm92_vm7 = vcmp.eq.s32.totalorder %v64_v4, %v405_v8  ;;  %v408_v21 = vsel %vm91_vm6, 1.0, %v605_v13  ;;  %p574_p2 = scmp.ne.s32.totalorder %s391_s4, %s573_s23  ;;  %p578_p3 = scmp.lt.s32.totalorder %s391_s4, %s391_s4 }
  0x2f   :  { %v409_v22 = vsel %vm92_vm7, 1.0, %v605_v13  ;;  %vm119_vm8 = vcmp.eq.s32.totalorder %v63_v3, %v666_v7  ;;  %vm120_vm9 = vcmp.eq.s32.totalorder %v64_v4, %v666_v7  ;;  %vm73_vm10 = vcmp.eq.s32.totalorder %v61_v1, %v400_v18  ;;  %p579_p4 = scmp.lt.s32.totalorder %s577_s24, %s573_s23 }
  0x30   :  { %v500_v23 = vpack.c.bf16 %v142_v20, %v141_v19  ;;  %v417_v24 = vsel %vm119_vm8, 1.0, %v605_v13  ;;  %v418_v25 = vsel %vm120_vm9, 1.0, %v605_v13  ;;  %vm74_vm11 = vcmp.eq.s32.totalorder %v62_v2, %v400_v18 }
  0x31   :  { %v143_v26 = vsub.f32 %v408_v21, %v417_v24  ;;  %v144_v27 = vsub.f32 %v409_v22, %v418_v25  ;;  %vm93_vm12 = vcmp.eq.s32.totalorder %v65_v5, %v405_v8  ;;  %vm492_vm13 = vmpackc.low %vm74_vm11, %vm73_vm10  ;;  %vm94_vm14 = vcmp.eq.s32.totalorder %v66_v6, %v405_v8  ;;  %p580_p5 = por %p579_p4, %p578_p3 }
  0x32   :  { %501 = vmatprep.subr.bf16.mxu1 %v500_v23  ;;  %v410_v28 = vsel %vm93_vm12, 1.0, %v605_v13  ;;  %vm121_vm15 = vcmp.eq.s32.totalorder %v65_v5, %v666_v7  ;;  %vm122_vm2 = vcmp.eq.s32.totalorder %v66_v6, %v666_v7  ;;  %493 = vmatprep.subr.msk.bf16.mxu0 %vm492_vm13, %v606_v30  ;;  %v411_v31 = vsel %vm94_vm14, 1.0, %v605_v13 }
  0x33   :  { %503 = vmatpush3.bf16.msra.mxu1 %v500_v23  ;;  %v504_v29 = vpack.c.bf16 %v144_v27, %v143_v26  ;;  %v419_v32 = vsel %vm121_vm15, 1.0, %v605_v13  ;;  %v420_v33 = vsel %vm122_vm2, 1.0, %v605_v13  ;;  %495 = vmatpush3.bf16.msk.msra.mxu0 %vm492_vm13, %v606_v30  ;;  %vm75_vm3 = vcmp.eq.s32.totalorder %v63_v3, %v400_v18  ;;  %p581_p6 = pnand %p580_p5, %p574_p2 }
  0x34   :  { %v145_v34 = vsub.f32 %v410_v28, %v419_v32  ;;  %v146_v35 = vsub.f32 %v411_v31, %v420_v33  ;;  %vm76_vm4 = vcmp.eq.s32.totalorder %v64_v4, %v400_v18  ;;  %vm95_vm6 = vcmp.eq.s32.totalorder %v67_v9, %v405_v8 }
  0x35   :  { %505 = vmatprep.subr.bf16.mxu1 %v504_v29  ;;  %vm496_vm5 = vmpackc.low %vm76_vm4, %vm75_vm3  ;;  %vm96_vm7 = vcmp.eq.s32.totalorder %v68_v10, %v405_v8  ;;  %vm123_vm8 = vcmp.eq.s32.totalorder %v67_v9, %v666_v7  ;;  %vm124_vm9 = vcmp.eq.s32.totalorder %v68_v10, %v666_v7  ;;  %v412_v37 = vsel %vm95_vm6, 1.0, %v605_v13 }
  0x36   :  { %v508_v36 = vpack.c.bf16 %v146_v35, %v145_v34  ;;  %497 = vmatprep.subr.msk.bf16.mxu0 %vm496_vm5, %v606_v30  ;;  %v413_v38 = vsel %vm96_vm7, 1.0, %v605_v13  ;;  %v421_v39 = vsel %vm123_vm8, 1.0, %v605_v13  ;;  %v422_v40 = vsel %vm124_vm9, 1.0, %v605_v13 }
  0x37   :  { %507 = vmatpush3.bf16.msra.mxu1 %v504_v29  ;;  %v147_v41 = vsub.f32 %v412_v37, %v421_v39  ;;  %499 = vmatpush3.bf16.msk.msra.mxu0 %vm496_vm5, %v606_v30  ;;  %v148_v42 = vsub.f32 %v413_v38, %v422_v40 }
  0x38   :  { %509 = vmatprep.subr.bf16.mxu1 %v508_v36 }
  0x39   :  { %v512_v45 = vpack.c.bf16 %v148_v42, %v147_v41 }
  0x3a   :  { %465 = vmatmul.mubr.msk.f32.vlgmr.msra.gmra.mrb[0].mxu0 %vm149_vm0, %v50_v43 }
  0x3b   :  { %511 = vmatpush3.bf16.msra.mxu1 %v508_v36  ;;  %467 = vmatprep.mubr.msk.f32.mxu0 %vm149_vm0, %v51_v44 }
  0x3c   :  { %513 = vmatprep.subr.bf16.mxu1 %v512_v45 }
  0x3e   :  { %468 = vmatmul.mubr.msk.f32.gmra.mrb[2].mxu0 %vm149_vm0, %v52_v46  ;;  %vm369_vm0 = vcmp.lt.s32.totalorder %v365_v11, 8 }
  0x3f   :  { %515 = vmatpush3.bf16.msra.mxu1 %v512_v45 }
  0x42   :  { %487 = vmatmul.mubr.msk.f32.vlgmr.msra.gmra.mrb[0].mxu1 %vm247_vm1, %v54_v47 }
  0x43   :  { %489 = vmatprep.mubr.msk.f32.mxu1 %vm247_vm1, %v55_v48 }
  0x46   :  { %490 = vmatmul.mubr.msk.f32.gmra.mrb[2].mxu1 %vm247_vm1, %v56_v49  ;;  %vm371_vm1 = vcmask 1040384  }
 0x10d   :  { %v466_v50 = vpop.f32.mrb[0].mxu0 }
 0x10e   :  { %v228_v51 = vpop.f32.mrb[1].mxu0 }
 0x111   :  { %v469_v52 = vpop.f32.mrb[2].mxu0 }
 0x112   :  { %v238_v53 = vpop.f32.mrb[3].mxu0 }
 0x115   :  { %v488_v54 = vpop.f32.mrb[0].mxu1 }
 0x116   :  { %v346_v55 = vmul.f32 %v488_v54, %v466_v50  ;;  %v326_v56 = vpop.f32.mrb[1].mxu1 }
 0x117   :  { %v345_v57 = vmul.f32 %v326_v56, %v228_v51 }
 0x119   :  { %v349_v58 = vadd.f32 %v346_v55, %v345_v57  ;;  %v491_v59 = vpop.f32.mrb[2].mxu1 }
 0x11a   :  { %v348_v60 = vmul.f32 %v491_v59, %v469_v52  ;;  %v336_v61 = vpop.f32.mrb[3].mxu1 }
 0x11b   :  { %v347_v62 = vmul.f32 %v336_v61, %v238_v53 }
 0x11d   :  { %v350_v63 = vadd.f32 %v349_v58, %v347_v62 }
 0x11f   :  { %v351_v1 = vadd.f32 %v350_v63, %v348_v60 }
 0x121   :  { %v352_v2 = vrot.slane %v351_v1, 4 }
 0x123   :  { %v353_v3 = vadd.f32 %v352_v2, %v351_v1 }
 0x125   :  { %v354_v4 = vrot.slane %v353_v3, 2 }
 0x127   :  { %v355_v5 = vadd.f32 %v354_v4, %v353_v3 }
 0x129   :  { %v356_v6 = vrot.slane %v355_v5, 1 }
 0x12b   :  { %v357_v7 = vadd.f32 %v356_v6, %v355_v5 }
 0x12d   :  { %v435_v8 = vmul.f32 -1.442695, %v357_v7 }
 0x12f   :  { %525 = vpow2.f32 %v435_v8 }
 0x139   :  { %v526_v9 = vpop.eup %525 }
 0x13a   :  { %v361_v10 = vadd.f32 1.0, %v526_v9 }
 0x13c   :  { %527 = vrcp.f32 %v361_v10 }
 0x146   :  { %v528_v12 = vpop.eup %527 }
 0x147   :  { %v370_v13 = vsel %vm369_vm0, %v528_v12, 0.0 }
 0x148   :  { %v372_v14 = vsel %vm371_vm1, %v370_v13, 0.0 }
 0x149   :  { %373 = vadd.xlane.f32.xlu0 %v372_v14 }
 0x1d6   :  { %v374_v15 = vpop.xlane.xlu0 %373 }
 0x1d7   :  { %v375_v16 = vrot.slane %v374_v15, 4 }
 0x1d9   :  { %v376_v17 = vadd.f32 %v375_v16, %v374_v15 }
 0x1db   :  { %v377_v18 = vrot.slane %v376_v17, 2 }
 0x1dd   :  { %v378_v19 = vadd.f32 %v377_v18, %v376_v17 }
 0x1df   :  { %v379_v20 = vrot.slane %v378_v19, 1 }
 0x1e1   :  { %v380_v21 = vadd.f32 %v379_v20, %v378_v19 }
 0x1e3   :  { %516 = vpush %v380_v21 }
 0x214   :  { %s517_s22 = spop %516 }
 0x215   :  { %v382_v22 = vstv %s517_s22 }
 0x216   :  { %383 = vst [vmem:[#allocation7] sm:$0x1] %v382_v22 }
 0x217   :  { %584 = shalt.err (!%p581_p6)
}
 0x218   :  { %s585_s27 = scalar_lea.hbm %s708_s5, 16 }
 0x219   :  { %p586_p7 = scmp.ne.s32.totalorder %s708_s5, %s585_s27  ;;  %p589_p8 = scmp.lt.u32.totalorder %s585_s27, %s708_s5 }
 0x21b   :  { %p591_p9 = pnand %p589_p8, %p586_p7 }
 0x21d   :  { %594 = shalt.err (!%p591_p9)
}
 0x21e   :  { %393 = dma.vmem_to_hbm [thread:$0]  %s391_s4, 16, %s708_s5, [#allocation4]  }
 0x21f   :  { %599 = dma.done.wait [#allocation4], 16  }
 0x220   :  { %600 = vsyncadd [#allocation4], 4294967280 }
 0x221   :  { %397 = vsyncpa [#allocation3], 1 }
 0x222   :  { %398 = vsyncpa [#allocation6], 1 }
 0x223   :  { %399 = vsyncpa [#allocation4], 1 }

</bundles_post_ra>
